<compile_context>
chip_gen: v7x
topology: tpu7x:2x2x1
jax: 0.10.0
libtpu: 0.0.40
codegen_flags: <defaults>
</compile_context>

<pallas_src>
import jax
import jax.numpy as jnp
from jax.experimental import pallas as pl
from jax.experimental.pallas import tpu as pltpu


# ---------------------------------------------------------------------------
# Kernels
# ---------------------------------------------------------------------------

def _tile_copy_kernel(x_ref, o_ref):
    # Straight VMEM tile copy: this is the materialization `.contiguous()` implies.
    o_ref[...] = x_ref[...]


def _dma_copy_kernel(x_hbm, o_hbm, sem):
    # One direct HBM->HBM DMA: no VMEM staging, no grid bookkeeping.
    cp = pltpu.make_async_copy(x_hbm, o_hbm, sem)
    cp.start()
    cp.wait()


# ---------------------------------------------------------------------------
# Helpers
# ---------------------------------------------------------------------------

def _min_sublanes(dtype) -> int:
    # Full-vreg sublane multiple per dtype: f32 -> 8, bf16 -> 16, int8/fp8 -> 32.
    itemsize = jnp.dtype(dtype).itemsize
    return max(8, 32 // max(itemsize, 1))


def _round_down(x: int, m: int) -> int:
    return (x // m) * m


def _chip_profile(target_block_bytes, vmem_limit_bytes, min_grid_steps):
    """Generation-aware defaults for the tiled fallback path."""
    kind = ""
    try:
        kind = jax.devices()[0].device_kind.lower()
    except Exception:
        pass
    try:
        vmem_cap = int(pltpu.get_tpu_info().vmem_capacity_bytes)
    except Exception:
        # Conservative fallback: smallest per-core VMEM across generations (v7x, 64 MiB).
        vmem_cap = 64 * 1024 * 1024

    if vmem_limit_bytes is None:
        # v5e/v6e (128 MiB physical) -> 96 MiB scoped; v7x (64 MiB) -> 48 MiB.
        vmem_limit_bytes = min((vmem_cap * 3) // 4, 96 * 1024 * 1024)
    if target_block_bytes is None:
        # Footprint ~= 4x block bytes (in + out, double-buffered) -> keep headroom.
        # v5e/v6e -> ~19 MiB blocks, v7x -> ~9.6 MiB blocks.
        target_block_bytes = max(min(vmem_limit_bytes // 5, 24 * 1024 * 1024),
                                 1 * 1024 * 1024)
    if min_grid_steps is None:
        # Only v7x has 2 TensorCores per chip: give each core >= 2 steps.
        # On 1-TC chips, splitting just adds per-step overhead.
        min_grid_steps = 4 if "v7" in kind else 1
    return target_block_bytes, vmem_limit_bytes, min_grid_steps


def _lane_dense_factorization(total, itemsize, target_block_bytes, sub, min_grid_steps):
    """Pick (M', N') with M'*N' == total and N' a multiple of 128.

    The copy is flat, so the 2-D factorization is arbitrary: choosing a
    128-multiple N' guarantees lane-dense, unmasked stores on every block.
    Prefers the largest N' whose (sub, N') block fits the block budget while
    still leaving enough rows for min_grid_steps grid steps.
    """
    if total % 128 != 0:
        return None
    q = total // 128
    budget_cap = max(target_block_bytes // (sub * 128 * itemsize), 1)
    row_cap = max(total // (128 * sub * max(min_grid_steps, 1)), 1)
    cap = min(budget_cap, row_cap, q)
    for m in range(cap, 0, -1):
        if q % m == 0:
            n = 128 * m
            return (total // n, n)
    return None  # unreachable: m == 1 always divides


# ---------------------------------------------------------------------------
# Copy implementations
# ---------------------------------------------------------------------------

def _single_dma_copy(x2d, cost_estimate):
    M, N = x2d.shape
    return pl.pallas_call(
        _dma_copy_kernel,
        out_shape=jax.ShapeDtypeStruct((M, N), x2d.dtype),
        in_specs=[pl.BlockSpec(memory_space=pl.ANY)],
        out_specs=pl.BlockSpec(memory_space=pl.ANY),
        scratch_shapes=[pltpu.SemaphoreType.DMA],
        cost_estimate=cost_estimate,
    )(x2d)


def _tiled_copy(x2d, cost_estimate, target_block_bytes, vmem_limit_bytes, min_grid_steps):
    M, N = x2d.shape
    dtype = x2d.dtype
    itemsize = jnp.dtype(dtype).itemsize
    sub = _min_sublanes(dtype)

    target_block_bytes, vmem_limit_bytes, min_grid_steps = _chip_profile(
        target_block_bytes, vmem_limit_bytes, min_grid_steps)

    # Lane-dense re-factorization of the flat copy (free reshapes on contiguous data).
    total = M * N
    fact = _lane_dense_factorization(total, itemsize, target_block_bytes, sub,
                                     min_grid_steps)
    if fact is not None:
        Mp, Np = fact
        x_in = x2d.reshape(Mp, Np)
    else:
        Mp, Np = M, N
        x_in = x2d

    row_bytes = Np * itemsize
    if sub * row_bytes <= target_block_bytes or Np <= 128:
        # Common path: full-width (lane-dense) blocks, 1-D grid over rows.
        bn = Np
        bm = _round_down(max(target_block_bytes // row_bytes, sub), sub)
        bm = min(bm, Mp)  # bm == Mp (full dim) is always legal even if < sub
        if Mp >= sub * min_grid_steps and pl.cdiv(Mp, bm) < min_grid_steps:
            bm = max(sub, _round_down(pl.cdiv(Mp, min_grid_steps), sub))
        grid = (pl.cdiv(Mp, bm),)
        in_specs = [pl.BlockSpec((bm, bn), lambda i: (i, 0))]
        out_specs = pl.BlockSpec((bm, bn), lambda i: (i, 0))
        semantics = ("parallel",)
    else:
        # Rare fallback (total not 128-divisible AND rows enormous): split N on
        # 128-lane multiples; only the tail block gets masked stores.
        bm = min(sub, Mp)
        bn = min(max(_round_down(target_block_bytes // (bm * itemsize), 128), 128), Np)
        grid = (pl.cdiv(Mp, bm), pl.cdiv(Np, bn))
        in_specs = [pl.BlockSpec((bm, bn), lambda i, j: (i, j))]
        out_specs = pl.BlockSpec((bm, bn), lambda i, j: (i, j))
        semantics = ("parallel", "parallel")

    out = pl.pallas_call(
        _tile_copy_kernel,
        out_shape=jax.ShapeDtypeStruct((Mp, Np), dtype),
        grid_spec=pltpu.PrefetchScalarGridSpec(
            num_scalar_prefetch=0,
            grid=grid,
            in_specs=in_specs,
            out_specs=out_specs,
        ),
        compiler_params=pltpu.CompilerParams(
            dimension_semantics=semantics,
            vmem_limit_bytes=vmem_limit_bytes,
        ),
        cost_estimate=cost_estimate,
    )(x_in)
    return out.reshape(M, N)


# ---------------------------------------------------------------------------
# Public wrapper (== MergeTemporalDim(T).forward)
# ---------------------------------------------------------------------------

def merge_temporal_dim(
    x_seq: jax.Array,
    *,
    materialize: bool = True,      # False -> free metadata reshape (no copy at all)
    method: str = "dma",           # "dma" (default) | "tiled"
    target_block_bytes: int | None = None,
    vmem_limit_bytes: int | None = None,
    min_grid_steps: int | None = None,
) -> jax.Array:
    """Equivalent of MergeTemporalDim(T).forward(x_seq): (T, B, *rest) -> (T*B, *rest)."""
    T, B = x_seq.shape[0], x_seq.shape[1]
    rest = x_seq.shape[2:]
    out_shape = (T * B,) + rest
    M = T * B
    N = 1
    for d in rest:
        N *= d

    # Fast path / degenerate sizes: a metadata reshape is exactly flatten(0, 1)
    # on a contiguous array; `.contiguous()` only matters if a distinct buffer
    # (e.g. donation / layout boundary) is required.
    if not materialize or M == 0 or N == 0:
        return x_seq.reshape(out_shape)

    x2d = x_seq.reshape(M, N)  # free view for default row-major layouts
    itemsize = jnp.dtype(x_seq.dtype).itemsize
    cost = pl.CostEstimate(flops=0, transcendentals=0,
                           bytes_accessed=2 * M * N * itemsize)

    if method == "dma":
        out2d = _single_dma_copy(x2d, cost)
    elif method == "tiled":
        out2d = _tiled_copy(x2d, cost, target_block_bytes, vmem_limit_bytes,
                            min_grid_steps)
    else:
        raise ValueError(f"unknown method: {method!r}")

    return out2d.reshape(out_shape)


if __name__ == "__main__":
    key = jax.random.PRNGKey(0)

    # 1) Main case, consistent with an SNN input: (T, B, C, H, W), f32, DMA path.
    T, B, C, H, W = 4, 2, 4, 16, 16
    x_seq = jax.random.normal(key, (T, B, C, H, W), dtype=jnp.float32)
    ref = x_seq.reshape(T * B, C, H, W)
    out = jax.block_until_ready(merge_temporal_dim(x_seq))
    assert out.shape == (T * B, C, H, W), out.shape
    assert out.dtype == x_seq.dtype
    assert bool(jnp.array_equal(out, ref))

    # 2) Tiled fallback path with small blocks -> multi-step grid with ragged tail.
    T2, B2 = 5, 4
    x2 = jax.random.normal(jax.random.PRNGKey(0), (T2, B2, C, H, W), dtype=jnp.float32)
    out2 = jax.block_until_ready(
        merge_temporal_dim(x2, method="tiled", target_block_bytes=32 * 1024))
    assert bool(jnp.array_equal(out2, x2.reshape(T2 * B2, C, H, W)))

    # 3) bf16, tiled path with auto (chip-aware) block sizing.
    x3 = jax.random.normal(jax.random.PRNGKey(0), (T, B, C, H, W), dtype=jnp.bfloat16)
    out3 = jax.block_until_ready(merge_temporal_dim(x3, method="tiled"))
    assert out3.dtype == jnp.bfloat16
    assert bool(jnp.array_equal(out3, x3.reshape(T * B, C, H, W)))

    # 4) bf16 through the DMA path.
    out4 = jax.block_until_ready(merge_temporal_dim(x3))
    assert bool(jnp.array_equal(out4, x3.reshape(T * B, C, H, W)))

    # 5) Free-reshape bypass (no materialization requested).
    out5 = jax.block_until_ready(merge_temporal_dim(x_seq, materialize=False))
    assert bool(jnp.array_equal(out5, ref))

    print("KERNEL_OK")
</pallas_src>

<mosaic_0001>
module attributes {stable_mosaic.version = 11 : i64} {
  func.func @_dma_copy_kernel(%arg0: memref<8x1024xf32, #tpu.memory_space<any>>, %arg1: memref<8x1024xf32, #tpu.memory_space<any>>, %arg2: memref<!tpu.dma_semaphore, #tpu.memory_space<semaphore_mem>>) attributes {dimension_semantics = [], scalar_prefetch = 0 : i64, scratch_operands = 1 : i64, tpu.core_type = #tpu.core_type<tc>} {
    tpu.enqueue_dma source(%arg0 : memref<8x1024xf32, #tpu.memory_space<any>>) target(%arg1 : memref<8x1024xf32, #tpu.memory_space<any>>) target_semaphore(%arg2 : memref<!tpu.dma_semaphore, #tpu.memory_space<semaphore_mem>>)
    tpu.wait_dma2 semaphore(%arg2 : memref<!tpu.dma_semaphore, #tpu.memory_space<semaphore_mem>>) src(%arg0 : memref<8x1024xf32, #tpu.memory_space<any>>) dst(%arg1 : memref<8x1024xf32, #tpu.memory_space<any>>)
    return
  }
}

</mosaic_0001>

<bundles_post_ra>
// kernel: tpu_custom_call.1
= control target key start
LH: loop header
LB: loop body
LE: loop exit
PB: predicated region body
PF: predicated region fallthrough
CT: control target
= control target key end

     0   :  { %s35_s6 = smov [#allocation2]   ;;  %s36_s7 = smov [#allocation3]   ;;  %s54_s0 = inlined_call_operand.hbm [shape: f32[8,1024], index: 0, kind: input, shape index: {}]   ;;  %s55_s1 = inlined_call_operand.hbm [shape: f32[8,1024], index: 1, kind: output, shape index: {}]  }
   0x1   :  { %s37_s8 = smov 0  }
   0x2   :  { %18 = dma.general %s54_s0, 1024, %s55_s1, %s35_s6, %s36_s7, [#allocation4], %s37_s8, 0  }
   0x3   :  { %33 = dma.done.wait [#allocation2], 1024 }
   0x4   :  { %34 = vsyncadd [#allocation2], 4294966272 }
   0x5   :  { %23 = vsyncmov [#allocation2] }
   0x8   :  { %s24_s13 = vpop.sfrf %23 }
   0x9   :  { %p29_p0 = scmp.ne.s32.totalorder %s24_s13, 0 }
   0xb   :  { %28 = shalt.err (%p29_p0)  }

</bundles_post_ra>
